<compile_context>
chip_gen: v7x
topology: tpu7x:2x2x1
jax: 0.10.0
libtpu: 0.0.40
codegen_flags: <defaults>
</compile_context>

<pallas_src>
import functools

import jax
import jax.numpy as jnp
from jax.experimental import pallas as pl
from jax.experimental.pallas import tpu as pltpu


def _duc_kernel(x_ref, w_ref, mask_ref, scale_ref, bias_ref, o_ref,
                xpad_ref, patch_ref, *, W, S, Cin, Cin_p):
    """Fused 3x3 same-conv + folded BN(eval) + ReLU for one batch tile.

    Layout: channel-major with the flattened spatial dim S = H*W on the lane
    axis, so every tensor touched here is lane-dense:

      x_ref     (Bn, Cin, S)        f32   input images (NCHW, spatial flattened)
      w_ref     (Cout, 9*Cin_p)     f32   weights, (ky,kx,ci) major, ci padded
      mask_ref  (9, 1, S)           f32   0/1 validity mask per 3x3 tap
      scale_ref (Cout, 1)           f32   gamma / sqrt(var + eps)
      bias_ref  (Cout, 1)           f32   scale*(conv_bias - mean) + beta
      o_ref     (Bn, Cout, S)       bf16  conv+BN+ReLU output (NCHW order)
      xpad_ref  (Cin, S + 2*W + 2)  f32   scratch: flat zero-padded image rows
      patch_ref (9*Cin_p, S)        f32   scratch: im2col, K on sublanes,
                                          S on lanes (MXU-native RHS layout)
    """
    Bn = x_ref.shape[0]
    pad = W + 1

    # Scratch persists across grid steps: zero ONLY once.  The halo columns of
    # xpad and the Cin->Cin_p padding rows of patch are never written again;
    # every image fully overwrites the interiors (no per-step memset).
    @pl.when(pl.program_id(0) == 0)
    def _init():
        xpad_ref[...] = jnp.zeros_like(xpad_ref)
        patch_ref[...] = jnp.zeros_like(patch_ref)

    for b in range(Bn):  # static unroll, Bn is small
        # Flat zero-padded copy of image b: xpad[:, pad + s] = x[b, :, s].
        xpad_ref[:, pad:pad + S] = x_ref[b]

        # im2col: each of the 9 taps is a static 256-wide lane window of xpad
        # (dense load), masked at the image edges, written as an 8-aligned
        # sublane block of the (K, S) patch -> no masked-lane stores, no lane
        # rotates on the store path.
        for k in range(9):
            dy, dx = k // 3 - 1, k % 3 - 1
            off = pad + dy * W + dx                     # static, in [0, 2*pad]
            tap = xpad_ref[:, off:off + S]              # (Cin, S)
            patch_ref[k * Cin_p:k * Cin_p + Cin, :] = tap * mask_ref[k]

        # One MXU matmul per image: (Cout, K) @ (K, S) -> (Cout, S), f32 acc.
        acc = jnp.dot(w_ref[...], patch_ref[...],
                      preferred_element_type=jnp.float32)

        # Folded conv-bias + BN (eval) + ReLU on 256-wide lanes; the (Cout, 1)
        # columns broadcast along lanes (no relayout needed).
        y = jnp.maximum(acc * scale_ref[...] + bias_ref[...], 0.0)

        # (Cout, S) == NCHW for this image: lane-dense bf16 store.
        o_ref[b] = y.astype(o_ref.dtype)


def _pick_batch_tile(n, max_tile=8):
    """Largest divisor of n that is <= max_tile (images per grid step)."""
    for bn in range(min(n, max_tile), 0, -1):
        if n % bn == 0:
            return bn
    return 1


@functools.partial(jax.jit, static_argnames=("upscale_factor",))
def duc_forward(x_nchw, w_oihw, conv_bias, gamma, beta, run_mean, run_var,
                upscale_factor=2, eps=1e-5):
    """DUC forward: Conv3x3(pad=1) -> BatchNorm2d(eval) -> ReLU -> PixelShuffle.

    x_nchw: (N, Cin, H, W) f32  ->  (N, planes, H*r, W*r) f32
    """
    N, Cin, H, W = x_nchw.shape
    Cout = w_oihw.shape[0]            # planes * r^2
    r = upscale_factor
    planes = Cout // (r * r)
    S = H * W
    Cin_p = -(-Cin // 8) * 8          # pad channel count to a sublane multiple
    K_p = 9 * Cin_p

    # ---- glue (free reshapes / tiny constants; no layout HBM passes) --------
    # Input: NCHW with spatial flattened onto the lane axis -- a free reshape;
    # no transpose, no separate cast pass (kernel consumes f32 directly).
    x_flat = x_nchw.reshape(N, Cin, S)

    # Weights: OIHW -> (co, ky, kx, ci) -> (Cout, 9, Cin_p) zero-padded
    # -> (Cout, K_p), matching patch row order (k = ky*3 + kx major, ci minor).
    w_k = jnp.transpose(w_oihw, (0, 2, 3, 1)).reshape(Cout, 9, Cin)
    w_flat = jnp.zeros((Cout, 9, Cin_p), jnp.float32).at[:, :, :Cin].set(w_k)
    w_flat = w_flat.reshape(Cout, K_p)

    # Fold conv bias + eval-mode BN into one per-channel scale / bias column.
    scale = gamma / jnp.sqrt(run_var + eps)
    fbias = scale * (conv_bias - run_mean) + beta
    scale_col = scale.reshape(Cout, 1).astype(jnp.float32)
    bias_col = fbias.reshape(Cout, 1).astype(jnp.float32)

    # 0/1 validity masks for the 9 taps (zero halo / row-wrap positions).
    hh, ww = jnp.meshgrid(jnp.arange(H), jnp.arange(W), indexing="ij")
    masks = []
    for k in range(9):
        dy, dx = k // 3 - 1, k % 3 - 1
        ok = (hh + dy >= 0) & (hh + dy < H) & (ww + dx >= 0) & (ww + dx < W)
        masks.append(ok.reshape(1, S))
    mask = jnp.stack(masks, axis=0).astype(jnp.float32)        # (9, 1, S)

    # ---- Pallas kernel -------------------------------------------------------
    bn = _pick_batch_tile(N)   # images per grid step (amortize per-step cost)
    # TODO(synk): on v7x with tiny N, prefer bn = ceil(N/2) so both TensorCores
    # get work; for realistic DUC shapes (large H*W / Cin) additionally tile S
    # into lane blocks and 9*Cin into K chunks with an f32 VMEM accumulator and
    # set vmem_limit_bytes (v7x: 64 MiB phys / 32 MiB scoped, v5e: 16 MiB scoped).
    kernel = functools.partial(_duc_kernel, W=W, S=S, Cin=Cin, Cin_p=Cin_p)

    flops = 2 * N * S * 9 * Cin * Cout
    bytes_accessed = (x_flat.size * 4 + w_flat.size * 4 + mask.size * 4
                      + 2 * Cout * 4 + N * Cout * S * 2)

    y_flat = pl.pallas_call(
        kernel,
        out_shape=jax.ShapeDtypeStruct((N, Cout, S), jnp.bfloat16),
        grid_spec=pltpu.PrefetchScalarGridSpec(
            num_scalar_prefetch=0,
            grid=(N // bn,),
            in_specs=[
                pl.BlockSpec((bn, Cin, S), lambda n: (n, 0, 0)),
                pl.BlockSpec((Cout, K_p), lambda n: (0, 0)),
                pl.BlockSpec((9, 1, S), lambda n: (0, 0, 0)),
                pl.BlockSpec((Cout, 1), lambda n: (0, 0)),
                pl.BlockSpec((Cout, 1), lambda n: (0, 0)),
            ],
            out_specs=pl.BlockSpec((bn, Cout, S), lambda n: (n, 0, 0)),
            scratch_shapes=[
                pltpu.VMEM((Cin, S + 2 * W + 2), jnp.float32),   # padded rows
                pltpu.VMEM((K_p, S), jnp.float32),               # im2col patch
            ],
        ),
        compiler_params=pltpu.CompilerParams(
            dimension_semantics=("parallel",)),
        cost_estimate=pl.CostEstimate(flops=flops, transcendentals=0,
                                      bytes_accessed=bytes_accessed),
    )(x_flat, w_flat, mask, scale_col, bias_col)

    # ---- glue: PixelShuffle (PyTorch semantics) + cast back to f32 -----------
    # Kernel output is already NCHW, so this is two free reshapes plus ONE fused
    # XLA transpose over the (bf16) kernel output.
    # TODO(synk): for large shapes, fold this permutation into the kernel's
    # output layout to save the extra HBM pass.
    y = y_flat.reshape(N, planes, r, r, H, W)      # (n, c, i, j, h, w)
    y = jnp.transpose(y, (0, 1, 4, 2, 5, 3))       # (n, c, h, i, w, j)
    return y.reshape(N, planes, H * r, W * r).astype(jnp.float32)


def _reference(x_nchw, w_oihw, conv_bias, gamma, beta, run_mean, run_var,
               upscale_factor=2, eps=1e-5):
    """Pure-JAX reference of the PyTorch module (eval-mode BN)."""
    y = jax.lax.conv_general_dilated(
        x_nchw, w_oihw, window_strides=(1, 1), padding=((1, 1), (1, 1)),
        dimension_numbers=("NCHW", "OIHW", "NCHW"),
        precision=jax.lax.Precision.HIGHEST)
    y = y + conv_bias[None, :, None, None]
    y = (y - run_mean[None, :, None, None]) / jnp.sqrt(
        run_var[None, :, None, None] + eps)
    y = y * gamma[None, :, None, None] + beta[None, :, None, None]
    y = jnp.maximum(y, 0.0)
    N, C, H, W = y.shape
    r = upscale_factor
    planes = C // (r * r)
    y = y.reshape(N, planes, r, r, H, W)
    y = jnp.transpose(y, (0, 1, 4, 2, 5, 3))
    return y.reshape(N, planes, H * r, W * r)


if __name__ == "__main__":
    # Small shapes: DUC(inplanes=4, planes=4, upscale_factor=2)
    N, Cin, H, W = 2, 4, 16, 16
    planes, r = 4, 2
    Cout = planes * r * r   # 16

    key = jax.random.PRNGKey(0)
    ks = jax.random.split(key, 7)
    x = jax.random.normal(ks[0], (N, Cin, H, W), jnp.float32)
    w = jax.random.normal(ks[1], (Cout, Cin, 3, 3), jnp.float32) * 0.1
    conv_bias = jax.random.normal(ks[2], (Cout,), jnp.float32) * 0.1
    gamma = 1.0 + 0.1 * jax.random.normal(ks[3], (Cout,), jnp.float32)
    beta = 0.1 * jax.random.normal(ks[4], (Cout,), jnp.float32)
    run_mean = 0.1 * jax.random.normal(ks[5], (Cout,), jnp.float32)
    run_var = jnp.abs(1.0 + 0.1 * jax.random.normal(ks[6], (Cout,), jnp.float32))

    out = duc_forward(x, w, conv_bias, gamma, beta, run_mean, run_var,
                      upscale_factor=r)
    out = jax.block_until_ready(out)

    ref = _reference(x, w, conv_bias, gamma, beta, run_mean, run_var,
                     upscale_factor=r)

    assert out.shape == (N, planes, H * r, W * r), out.shape
    # The kernel computes in f32 but stores bf16 activations (and uses the
    # default MXU product precision), so the tolerance is bf16-grade.
    max_err = float(jnp.max(jnp.abs(out - ref)))
    assert jnp.allclose(out, ref, atol=2e-2, rtol=2e-2), max_err
    print("KERNEL_OK")
</pallas_src>

<mosaic_0001>
module attributes {stable_mosaic.version = 11 : i64} {
  func.func @_duc_kernel(%arg0: i32, %arg1: memref<2x4x256xf32, #tpu.memory_space<vmem>>, %arg2: memref<16x72xf32, #tpu.memory_space<vmem>>, %arg3: memref<9x1x256xf32, #tpu.memory_space<vmem>>, %arg4: memref<16x1xf32, #tpu.memory_space<vmem>>, %arg5: memref<16x1xf32, #tpu.memory_space<vmem>>, %arg6: memref<2x16x256xbf16, #tpu.memory_space<vmem>>, %arg7: memref<4x290xf32, #tpu.memory_space<vmem>>, %arg8: memref<72x256xf32, #tpu.memory_space<vmem>>) attributes {dimension_semantics = [#tpu.dimension_semantics<parallel>], iteration_bounds = array<i64: 1>, scalar_prefetch = 0 : i64, scratch_operands = 2 : i64, tpu.core_type = #tpu.core_type<tc>, window_params = [{transform_indices = @transform_0, window_bounds = array<i64: 2, 4, 256>}, {pipeline_mode = #tpu.pipeline_mode<synchronous>, transform_indices = @transform_1, window_bounds = array<i64: 16, 72>}, {pipeline_mode = #tpu.pipeline_mode<synchronous>, transform_indices = @transform_2, window_bounds = array<i64: 9, 1, 256>}, {pipeline_mode = #tpu.pipeline_mode<synchronous>, transform_indices = @transform_3, window_bounds = array<i64: 16, 1>}, {pipeline_mode = #tpu.pipeline_mode<synchronous>, transform_indices = @transform_4, window_bounds = array<i64: 16, 1>}, {transform_indices = @transform_5, window_bounds = array<i64: 2, 16, 256>}]} {
    %c0_i32 = arith.constant 0 : i32
    %0 = arith.cmpi eq, %arg0, %c0_i32 : i32
    %1 = arith.extui %0 : i1 to i32
    %c0_i32_0 = arith.constant 0 : i32
    %2 = arith.cmpi ne, %1, %c0_i32_0 : i32
    scf.if %2 {
      %cst_142 = arith.constant 0.000000e+00 : f32
      %147 = vector.broadcast %cst_142 : f32 to vector<4x290xf32>
      %c0_143 = arith.constant 0 : index
      %c0_144 = arith.constant 0 : index
      %148 = vector.load %arg7[%c0_143, %c0_144] : memref<4x290xf32, #tpu.memory_space<vmem>>, vector<4x290xf32>
      tpu.vector_store %arg7[%c0_143, %c0_144], %147 {strides = array<i32>} : memref<4x290xf32, #tpu.memory_space<vmem>>, vector<4x290xf32>,
      %cst_145 = arith.constant 0.000000e+00 : f32
      %149 = vector.broadcast %cst_145 : f32 to vector<72x256xf32>
      %c0_146 = arith.constant 0 : index
      %c0_147 = arith.constant 0 : index
      %150 = vector.load %arg8[%c0_146, %c0_147] : memref<72x256xf32, #tpu.memory_space<vmem>>, vector<72x256xf32>
      tpu.vector_store %arg8[%c0_146, %c0_147], %149 {strides = array<i32>} : memref<72x256xf32, #tpu.memory_space<vmem>>, vector<72x256xf32>,
    } else {
    }
    %c0 = arith.constant 0 : index
    %c0_1 = arith.constant 0 : index
    %c0_2 = arith.constant 0 : index
    %3 = vector.load %arg1[%c0, %c0_1, %c0_2] : memref<2x4x256xf32, #tpu.memory_space<vmem>>, vector<1x4x256xf32>
    %4 = vector.shape_cast %3 : vector<1x4x256xf32> to vector<4x256xf32>
    %c0_3 = arith.constant 0 : index
    %c17 = arith.constant 17 : index
    %5 = vector.load %arg7[%c0_3, %c17] : memref<4x290xf32, #tpu.memory_space<vmem>>, vector<4x256xf32>
    tpu.vector_store %arg7[%c0_3, %c17], %4 {strides = array<i32>} : memref<4x290xf32, #tpu.memory_space<vmem>>, vector<4x256xf32>,
    %c0_4 = arith.constant 0 : index
    %c0_5 = arith.constant 0 : index
    %6 = vector.load %arg7[%c0_4, %c0_5] : memref<4x290xf32, #tpu.memory_space<vmem>>, vector<4x256xf32>
    %c0_6 = arith.constant 0 : index
    %c0_7 = arith.constant 0 : index
    %c0_8 = arith.constant 0 : index
    %7 = vector.load %arg3[%c0_6, %c0_7, %c0_8] : memref<9x1x256xf32, #tpu.memory_space<vmem>>, vector<1x1x256xf32>
    %8 = vector.shape_cast %7 : vector<1x1x256xf32> to vector<1x256xf32>
    %9 = vector.broadcast %8 : vector<1x256xf32> to vector<4x256xf32>
    %10 = arith.mulf %6, %9 : vector<4x256xf32>
    %c0_9 = arith.constant 0 : index
    %c0_10 = arith.constant 0 : index
    %11 = vector.load %arg8[%c0_9, %c0_10] : memref<72x256xf32, #tpu.memory_space<vmem>>, vector<4x256xf32>
    tpu.vector_store %arg8[%c0_9, %c0_10], %10 {strides = array<i32>} : memref<72x256xf32, #tpu.memory_space<vmem>>, vector<4x256xf32>,
    %c0_11 = arith.constant 0 : index
    %c1 = arith.constant 1 : index
    %12 = vector.load %arg7[%c0_11, %c1] : memref<4x290xf32, #tpu.memory_space<vmem>>, vector<4x256xf32>
    %c1_12 = arith.constant 1 : index
    %c0_13 = arith.constant 0 : index
    %c0_14 = arith.constant 0 : index
    %13 = vector.load %arg3[%c1_12, %c0_13, %c0_14] : memref<9x1x256xf32, #tpu.memory_space<vmem>>, vector<1x1x256xf32>
    %14 = vector.shape_cast %13 : vector<1x1x256xf32> to vector<1x256xf32>
    %15 = vector.broadcast %14 : vector<1x256xf32> to vector<4x256xf32>
    %16 = arith.mulf %12, %15 : vector<4x256xf32>
    %c8 = arith.constant 8 : index
    %c0_15 = arith.constant 0 : index
    %17 = vector.load %arg8[%c8, %c0_15] : memref<72x256xf32, #tpu.memory_space<vmem>>, vector<4x256xf32>
    tpu.vector_store %arg8[%c8, %c0_15], %16 {strides = array<i32>} : memref<72x256xf32, #tpu.memory_space<vmem>>, vector<4x256xf32>,
    %c0_16 = arith.constant 0 : index
    %c2 = arith.constant 2 : index
    %18 = vector.load %arg7[%c0_16, %c2] : memref<4x290xf32, #tpu.memory_space<vmem>>, vector<4x256xf32>
    %c2_17 = arith.constant 2 : index
    %c0_18 = arith.constant 0 : index
    %c0_19 = arith.constant 0 : index
    %19 = vector.load %arg3[%c2_17, %c0_18, %c0_19] : memref<9x1x256xf32, #tpu.memory_space<vmem>>, vector<1x1x256xf32>
    %20 = vector.shape_cast %19 : vector<1x1x256xf32> to vector<1x256xf32>
    %21 = vector.broadcast %20 : vector<1x256xf32> to vector<4x256xf32>
    %22 = arith.mulf %18, %21 : vector<4x256xf32>
    %c16 = arith.constant 16 : index
    %c0_20 = arith.constant 0 : index
    %23 = vector.load %arg8[%c16, %c0_20] : memref<72x256xf32, #tpu.memory_space<vmem>>, vector<4x256xf32>
    tpu.vector_store %arg8[%c16, %c0_20], %22 {strides = array<i32>} : memref<72x256xf32, #tpu.memory_space<vmem>>, vector<4x256xf32>,
    %c0_21 = arith.constant 0 : index
    %c16_22 = arith.constant 16 : index
    %24 = vector.load %arg7[%c0_21, %c16_22] : memref<4x290xf32, #tpu.memory_space<vmem>>, vector<4x256xf32>
    %c3 = arith.constant 3 : index
    %c0_23 = arith.constant 0 : index
    %c0_24 = arith.constant 0 : index
    %25 = vector.load %arg3[%c3, %c0_23, %c0_24] : memref<9x1x256xf32, #tpu.memory_space<vmem>>, vector<1x1x256xf32>
    %26 = vector.shape_cast %25 : vector<1x1x256xf32> to vector<1x256xf32>
    %27 = vector.broadcast %26 : vector<1x256xf32> to vector<4x256xf32>
    %28 = arith.mulf %24, %27 : vector<4x256xf32>
    %c24 = arith.constant 24 : index
    %c0_25 = arith.constant 0 : index
    %29 = vector.load %arg8[%c24, %c0_25] : memref<72x256xf32, #tpu.memory_space<vmem>>, vector<4x256xf32>
    tpu.vector_store %arg8[%c24, %c0_25], %28 {strides = array<i32>} : memref<72x256xf32, #tpu.memory_space<vmem>>, vector<4x256xf32>,
    %c0_26 = arith.constant 0 : index
    %c17_27 = arith.constant 17 : index
    %30 = vector.load %arg7[%c0_26, %c17_27] : memref<4x290xf32, #tpu.memory_space<vmem>>, vector<4x256xf32>
    %c4 = arith.constant 4 : index
    %c0_28 = arith.constant 0 : index
    %c0_29 = arith.constant 0 : index
    %31 = vector.load %arg3[%c4, %c0_28, %c0_29] : memref<9x1x256xf32, #tpu.memory_space<vmem>>, vector<1x1x256xf32>
    %32 = vector.shape_cast %31 : vector<1x1x256xf32> to vector<1x256xf32>
    %33 = vector.broadcast %32 : vector<1x256xf32> to vector<4x256xf32>
    %34 = arith.mulf %30, %33 : vector<4x256xf32>
    %c32 = arith.constant 32 : index
    %c0_30 = arith.constant 0 : index
    %35 = vector.load %arg8[%c32, %c0_30] : memref<72x256xf32, #tpu.memory_space<vmem>>, vector<4x256xf32>
    tpu.vector_store %arg8[%c32, %c0_30], %34 {strides = array<i32>} : memref<72x256xf32, #tpu.memory_space<vmem>>, vector<4x256xf32>,
    %c0_31 = arith.constant 0 : index
    %c18 = arith.constant 18 : index
    %36 = vector.load %arg7[%c0_31, %c18] : memref<4x290xf32, #tpu.memory_space<vmem>>, vector<4x256xf32>
    %c5 = arith.constant 5 : index
    %c0_32 = arith.constant 0 : index
    %c0_33 = arith.constant 0 : index
    %37 = vector.load %arg3[%c5, %c0_32, %c0_33] : memref<9x1x256xf32, #tpu.memory_space<vmem>>, vector<1x1x256xf32>
    %38 = vector.shape_cast %37 : vector<1x1x256xf32> to vector<1x256xf32>
    %39 = vector.broadcast %38 : vector<1x256xf32> to vector<4x256xf32>
    %40 = arith.mulf %36, %39 : vector<4x256xf32>
    %c40 = arith.constant 40 : index
    %c0_34 = arith.constant 0 : index
    %41 = vector.load %arg8[%c40, %c0_34] : memref<72x256xf32, #tpu.memory_space<vmem>>, vector<4x256xf32>
    tpu.vector_store %arg8[%c40, %c0_34], %40 {strides = array<i32>} : memref<72x256xf32, #tpu.memory_space<vmem>>, vector<4x256xf32>,
    %c0_35 = arith.constant 0 : index
    %c32_36 = arith.constant 32 : index
    %42 = vector.load %arg7[%c0_35, %c32_36] : memref<4x290xf32, #tpu.memory_space<vmem>>, vector<4x256xf32>
    %c6 = arith.constant 6 : index
    %c0_37 = arith.constant 0 : index
    %c0_38 = arith.constant 0 : index
    %43 = vector.load %arg3[%c6, %c0_37, %c0_38] : memref<9x1x256xf32, #tpu.memory_space<vmem>>, vector<1x1x256xf32>
    %44 = vector.shape_cast %43 : vector<1x1x256xf32> to vector<1x256xf32>
    %45 = vector.broadcast %44 : vector<1x256xf32> to vector<4x256xf32>
    %46 = arith.mulf %42, %45 : vector<4x256xf32>
    %c48 = arith.constant 48 : index
    %c0_39 = arith.constant 0 : index
    %47 = vector.load %arg8[%c48, %c0_39] : memref<72x256xf32, #tpu.memory_space<vmem>>, vector<4x256xf32>
    tpu.vector_store %arg8[%c48, %c0_39], %46 {strides = array<i32>} : memref<72x256xf32, #tpu.memory_space<vmem>>, vector<4x256xf32>,
    %c0_40 = arith.constant 0 : index
    %c33 = arith.constant 33 : index
    %48 = vector.load %arg7[%c0_40, %c33] : memref<4x290xf32, #tpu.memory_space<vmem>>, vector<4x256xf32>
    %c7 = arith.constant 7 : index
    %c0_41 = arith.constant 0 : index
    %c0_42 = arith.constant 0 : index
    %49 = vector.load %arg3[%c7, %c0_41, %c0_42] : memref<9x1x256xf32, #tpu.memory_space<vmem>>, vector<1x1x256xf32>
    %50 = vector.shape_cast %49 : vector<1x1x256xf32> to vector<1x256xf32>
    %51 = vector.broadcast %50 : vector<1x256xf32> to vector<4x256xf32>
    %52 = arith.mulf %48, %51 : vector<4x256xf32>
    %c56 = arith.constant 56 : index
    %c0_43 = arith.constant 0 : index
    %53 = vector.load %arg8[%c56, %c0_43] : memref<72x256xf32, #tpu.memory_space<vmem>>, vector<4x256xf32>
    tpu.vector_store %arg8[%c56, %c0_43], %52 {strides = array<i32>} : memref<72x256xf32, #tpu.memory_space<vmem>>, vector<4x256xf32>,
    %c0_44 = arith.constant 0 : index
    %c34 = arith.constant 34 : index
    %54 = vector.load %arg7[%c0_44, %c34] : memref<4x290xf32, #tpu.memory_space<vmem>>, vector<4x256xf32>
    %c8_45 = arith.constant 8 : index
    %c0_46 = arith.constant 0 : index
    %c0_47 = arith.constant 0 : index
    %55 = vector.load %arg3[%c8_45, %c0_46, %c0_47] : memref<9x1x256xf32, #tpu.memory_space<vmem>>, vector<1x1x256xf32>
    %56 = vector.shape_cast %55 : vector<1x1x256xf32> to vector<1x256xf32>
    %57 = vector.broadcast %56 : vector<1x256xf32> to vector<4x256xf32>
    %58 = arith.mulf %54, %57 : vector<4x256xf32>
    %c64 = arith.constant 64 : index
    %c0_48 = arith.constant 0 : index
    %59 = vector.load %arg8[%c64, %c0_48] : memref<72x256xf32, #tpu.memory_space<vmem>>, vector<4x256xf32>
    tpu.vector_store %arg8[%c64, %c0_48], %58 {strides = array<i32>} : memref<72x256xf32, #tpu.memory_space<vmem>>, vector<4x256xf32>,
    %c0_49 = arith.constant 0 : index
    %c0_50 = arith.constant 0 : index
    %60 = vector.load %arg2[%c0_49, %c0_50] : memref<16x72xf32, #tpu.memory_space<vmem>>, vector<16x72xf32>
    %c0_51 = arith.constant 0 : index
    %c0_52 = arith.constant 0 : index
    %61 = vector.load %arg8[%c0_51, %c0_52] : memref<72x256xf32, #tpu.memory_space<vmem>>, vector<72x256xf32>
    %cst = arith.constant dense<0.000000e+00> : vector<16x256xf32>
    %62 = tpu.matmul %60, %61, %cst {dimension_numbers = #tpu.dot_dimension_numbers<[1], [0], [0], [1], [0, 0, 1, 1], [], []>} : vector<16x72xf32>, vector<72x256xf32>, vector<16x256xf32> -> vector<16x256xf32>
    %c0_53 = arith.constant 0 : index
    %c0_54 = arith.constant 0 : index
    %63 = vector.load %arg4[%c0_53, %c0_54] : memref<16x1xf32, #tpu.memory_space<vmem>>, vector<16x1xf32>
    %64 = vector.broadcast %63 : vector<16x1xf32> to vector<16x256xf32>
    %65 = arith.mulf %62, %64 : vector<16x256xf32>
    %c0_55 = arith.constant 0 : index
    %c0_56 = arith.constant 0 : index
    %66 = vector.load %arg5[%c0_55, %c0_56] : memref<16x1xf32, #tpu.memory_space<vmem>>, vector<16x1xf32>
    %67 = vector.broadcast %66 : vector<16x1xf32> to vector<16x256xf32>
    %68 = arith.addf %65, %67 : vector<16x256xf32>
    %cst_57 = arith.constant 0.000000e+00 : f32
    %69 = vector.broadcast %cst_57 : f32 to vector<16x256xf32>
    %70 = arith.maximumf %68, %69 : vector<16x256xf32>
    %71 = arith.truncf %70 : vector<16x256xf32> to vector<16x256xbf16>
    %c0_58 = arith.constant 0 : index
    %c0_59 = arith.constant 0 : index
    %c0_60 = arith.constant 0 : index
    %72 = vector.load %arg6[%c0_58, %c0_59, %c0_60] : memref<2x16x256xbf16, #tpu.memory_space<vmem>>, vector<1x16x256xbf16>
    %73 = vector.shape_cast %72 : vector<1x16x256xbf16> to vector<16x256xbf16>
    %74 = vector.shape_cast %71 : vector<16x256xbf16> to vector<1x16x256xbf16>
    tpu.vector_store %arg6[%c0_58, %c0_59, %c0_60], %74 {strides = array<i32>} : memref<2x16x256xbf16, #tpu.memory_space<vmem>>, vector<1x16x256xbf16>,
    %c1_61 = arith.constant 1 : index
    %c0_62 = arith.constant 0 : index
    %c0_63 = arith.constant 0 : index
    %75 = vector.load %arg1[%c1_61, %c0_62, %c0_63] : memref<2x4x256xf32, #tpu.memory_space<vmem>>, vector<1x4x256xf32>
    %76 = vector.shape_cast %75 : vector<1x4x256xf32> to vector<4x256xf32>
    %c0_64 = arith.constant 0 : index
    %c17_65 = arith.constant 17 : index
    %77 = vector.load %arg7[%c0_64, %c17_65] : memref<4x290xf32, #tpu.memory_space<vmem>>, vector<4x256xf32>
    tpu.vector_store %arg7[%c0_64, %c17_65], %76 {strides = array<i32>} : memref<4x290xf32, #tpu.memory_space<vmem>>, vector<4x256xf32>,
    %c0_66 = arith.constant 0 : index
    %c0_67 = arith.constant 0 : index
    %78 = vector.load %arg7[%c0_66, %c0_67] : memref<4x290xf32, #tpu.memory_space<vmem>>, vector<4x256xf32>
    %c0_68 = arith.constant 0 : index
    %c0_69 = arith.constant 0 : index
    %c0_70 = arith.constant 0 : index
    %79 = vector.load %arg3[%c0_68, %c0_69, %c0_70] : memref<9x1x256xf32, #tpu.memory_space<vmem>>, vector<1x1x256xf32>
    %80 = vector.shape_cast %79 : vector<1x1x256xf32> to vector<1x256xf32>
    %81 = vector.broadcast %80 : vector<1x256xf32> to vector<4x256xf32>
    %82 = arith.mulf %78, %81 : vector<4x256xf32>
    %c0_71 = arith.constant 0 : index
    %c0_72 = arith.constant 0 : index
    %83 = vector.load %arg8[%c0_71, %c0_72] : memref<72x256xf32, #tpu.memory_space<vmem>>, vector<4x256xf32>
    tpu.vector_store %arg8[%c0_71, %c0_72], %82 {strides = array<i32>} : memref<72x256xf32, #tpu.memory_space<vmem>>, vector<4x256xf32>,
    %c0_73 = arith.constant 0 : index
    %c1_74 = arith.constant 1 : index
    %84 = vector.load %arg7[%c0_73, %c1_74] : memref<4x290xf32, #tpu.memory_space<vmem>>, vector<4x256xf32>
    %c1_75 = arith.constant 1 : index
    %c0_76 = arith.constant 0 : index
    %c0_77 = arith.constant 0 : index
    %85 = vector.load %arg3[%c1_75, %c0_76, %c0_77] : memref<9x1x256xf32, #tpu.memory_space<vmem>>, vector<1x1x256xf32>
    %86 = vector.shape_cast %85 : vector<1x1x256xf32> to vector<1x256xf32>
    %87 = vector.broadcast %86 : vector<1x256xf32> to vector<4x256xf32>
    %88 = arith.mulf %84, %87 : vector<4x256xf32>
    %c8_78 = arith.constant 8 : index
    %c0_79 = arith.constant 0 : index
    %89 = vector.load %arg8[%c8_78, %c0_79] : memref<72x256xf32, #tpu.memory_space<vmem>>, vector<4x256xf32>
    tpu.vector_store %arg8[%c8_78, %c0_79], %88 {strides = array<i32>} : memref<72x256xf32, #tpu.memory_space<vmem>>, vector<4x256xf32>,
    %c0_80 = arith.constant 0 : index
    %c2_81 = arith.constant 2 : index
    %90 = vector.load %arg7[%c0_80, %c2_81] : memref<4x290xf32, #tpu.memory_space<vmem>>, vector<4x256xf32>
    %c2_82 = arith.constant 2 : index
    %c0_83 = arith.constant 0 : index
    %c0_84 = arith.constant 0 : index
    %91 = vector.load %arg3[%c2_82, %c0_83, %c0_84] : memref<9x1x256xf32, #tpu.memory_space<vmem>>, vector<1x1x256xf32>
    %92 = vector.shape_cast %91 : vector<1x1x256xf32> to vector<1x256xf32>
    %93 = vector.broadcast %92 : vector<1x256xf32> to vector<4x256xf32>
    %94 = arith.mulf %90, %93 : vector<4x256xf32>
    %c16_85 = arith.constant 16 : index
    %c0_86 = arith.constant 0 : index
    %95 = vector.load %arg8[%c16_85, %c0_86] : memref<72x256xf32, #tpu.memory_space<vmem>>, vector<4x256xf32>
    tpu.vector_store %arg8[%c16_85, %c0_86], %94 {strides = array<i32>} : memref<72x256xf32, #tpu.memory_space<vmem>>, vector<4x256xf32>,
    %c0_87 = arith.constant 0 : index
    %c16_88 = arith.constant 16 : index
    %96 = vector.load %arg7[%c0_87, %c16_88] : memref<4x290xf32, #tpu.memory_space<vmem>>, vector<4x256xf32>
    %c3_89 = arith.constant 3 : index
    %c0_90 = arith.constant 0 : index
    %c0_91 = arith.constant 0 : index
    %97 = vector.load %arg3[%c3_89, %c0_90, %c0_91] : memref<9x1x256xf32, #tpu.memory_space<vmem>>, vector<1x1x256xf32>
    %98 = vector.shape_cast %97 : vector<1x1x256xf32> to vector<1x256xf32>
    %99 = vector.broadcast %98 : vector<1x256xf32> to vector<4x256xf32>
    %100 = arith.mulf %96, %99 : vector<4x256xf32>
    %c24_92 = arith.constant 24 : index
    %c0_93 = arith.constant 0 : index
    %101 = vector.load %arg8[%c24_92, %c0_93] : memref<72x256xf32, #tpu.memory_space<vmem>>, vector<4x256xf32>
    tpu.vector_store %arg8[%c24_92, %c0_93], %100 {strides = array<i32>} : memref<72x256xf32, #tpu.memory_space<vmem>>, vector<4x256xf32>,
    %c0_94 = arith.constant 0 : index
    %c17_95 = arith.constant 17 : index
    %102 = vector.load %arg7[%c0_94, %c17_95] : memref<4x290xf32, #tpu.memory_space<vmem>>, vector<4x256xf32>
    %c4_96 = arith.constant 4 : index
    %c0_97 = arith.constant 0 : index
    %c0_98 = arith.constant 0 : index
    %103 = vector.load %arg3[%c4_96, %c0_97, %c0_98] : memref<9x1x256xf32, #tpu.memory_space<vmem>>, vector<1x1x256xf32>
    %104 = vector.shape_cast %103 : vector<1x1x256xf32> to vector<1x256xf32>
    %105 = vector.broadcast %104 : vector<1x256xf32> to vector<4x256xf32>
    %106 = arith.mulf %102, %105 : vector<4x256xf32>
    %c32_99 = arith.constant 32 : index
    %c0_100 = arith.constant 0 : index
    %107 = vector.load %arg8[%c32_99, %c0_100] : memref<72x256xf32, #tpu.memory_space<vmem>>, vector<4x256xf32>
    tpu.vector_store %arg8[%c32_99, %c0_100], %106 {strides = array<i32>} : memref<72x256xf32, #tpu.memory_space<vmem>>, vector<4x256xf32>,
    %c0_101 = arith.constant 0 : index
    %c18_102 = arith.constant 18 : index
    %108 = vector.load %arg7[%c0_101, %c18_102] : memref<4x290xf32, #tpu.memory_space<vmem>>, vector<4x256xf32>
    %c5_103 = arith.constant 5 : index
    %c0_104 = arith.constant 0 : index
    %c0_105 = arith.constant 0 : index
    %109 = vector.load %arg3[%c5_103, %c0_104, %c0_105] : memref<9x1x256xf32, #tpu.memory_space<vmem>>, vector<1x1x256xf32>
    %110 = vector.shape_cast %109 : vector<1x1x256xf32> to vector<1x256xf32>
    %111 = vector.broadcast %110 : vector<1x256xf32> to vector<4x256xf32>
    %112 = arith.mulf %108, %111 : vector<4x256xf32>
    %c40_106 = arith.constant 40 : index
    %c0_107 = arith.constant 0 : index
    %113 = vector.load %arg8[%c40_106, %c0_107] : memref<72x256xf32, #tpu.memory_space<vmem>>, vector<4x256xf32>
    tpu.vector_store %arg8[%c40_106, %c0_107], %112 {strides = array<i32>} : memref<72x256xf32, #tpu.memory_space<vmem>>, vector<4x256xf32>,
    %c0_108 = arith.constant 0 : index
    %c32_109 = arith.constant 32 : index
    %114 = vector.load %arg7[%c0_108, %c32_109] : memref<4x290xf32, #tpu.memory_space<vmem>>, vector<4x256xf32>
    %c6_110 = arith.constant 6 : index
    %c0_111 = arith.constant 0 : index
    %c0_112 = arith.constant 0 : index
    %115 = vector.load %arg3[%c6_110, %c0_111, %c0_112] : memref<9x1x256xf32, #tpu.memory_space<vmem>>, vector<1x1x256xf32>
    %116 = vector.shape_cast %115 : vector<1x1x256xf32> to vector<1x256xf32>
    %117 = vector.broadcast %116 : vector<1x256xf32> to vector<4x256xf32>
    %118 = arith.mulf %114, %117 : vector<4x256xf32>
    %c48_113 = arith.constant 48 : index
    %c0_114 = arith.constant 0 : index
    %119 = vector.load %arg8[%c48_113, %c0_114] : memref<72x256xf32, #tpu.memory_space<vmem>>, vector<4x256xf32>
    tpu.vector_store %arg8[%c48_113, %c0_114], %118 {strides = array<i32>} : memref<72x256xf32, #tpu.memory_space<vmem>>, vector<4x256xf32>,
    %c0_115 = arith.constant 0 : index
    %c33_116 = arith.constant 33 : index
    %120 = vector.load %arg7[%c0_115, %c33_116] : memref<4x290xf32, #tpu.memory_space<vmem>>, vector<4x256xf32>
    %c7_117 = arith.constant 7 : index
    %c0_118 = arith.constant 0 : index
    %c0_119 = arith.constant 0 : index
    %121 = vector.load %arg3[%c7_117, %c0_118, %c0_119] : memref<9x1x256xf32, #tpu.memory_space<vmem>>, vector<1x1x256xf32>
    %122 = vector.shape_cast %121 : vector<1x1x256xf32> to vector<1x256xf32>
    %123 = vector.broadcast %122 : vector<1x256xf32> to vector<4x256xf32>
    %124 = arith.mulf %120, %123 : vector<4x256xf32>
    %c56_120 = arith.constant 56 : index
    %c0_121 = arith.constant 0 : index
    %125 = vector.load %arg8[%c56_120, %c0_121] : memref<72x256xf32, #tpu.memory_space<vmem>>, vector<4x256xf32>
    tpu.vector_store %arg8[%c56_120, %c0_121], %124 {strides = array<i32>} : memref<72x256xf32, #tpu.memory_space<vmem>>, vector<4x256xf32>,
    %c0_122 = arith.constant 0 : index
    %c34_123 = arith.constant 34 : index
    %126 = vector.load %arg7[%c0_122, %c34_123] : memref<4x290xf32, #tpu.memory_space<vmem>>, vector<4x256xf32>
    %c8_124 = arith.constant 8 : index
    %c0_125 = arith.constant 0 : index
    %c0_126 = arith.constant 0 : index
    %127 = vector.load %arg3[%c8_124, %c0_125, %c0_126] : memref<9x1x256xf32, #tpu.memory_space<vmem>>, vector<1x1x256xf32>
    %128 = vector.shape_cast %127 : vector<1x1x256xf32> to vector<1x256xf32>
    %129 = vector.broadcast %128 : vector<1x256xf32> to vector<4x256xf32>
    %130 = arith.mulf %126, %129 : vector<4x256xf32>
    %c64_127 = arith.constant 64 : index
    %c0_128 = arith.constant 0 : index
    %131 = vector.load %arg8[%c64_127, %c0_128] : memref<72x256xf32, #tpu.memory_space<vmem>>, vector<4x256xf32>
    tpu.vector_store %arg8[%c64_127, %c0_128], %130 {strides = array<i32>} : memref<72x256xf32, #tpu.memory_space<vmem>>, vector<4x256xf32>,
    %c0_129 = arith.constant 0 : index
    %c0_130 = arith.constant 0 : index
    %132 = vector.load %arg2[%c0_129, %c0_130] : memref<16x72xf32, #tpu.memory_space<vmem>>, vector<16x72xf32>
    %c0_131 = arith.constant 0 : index
    %c0_132 = arith.constant 0 : index
    %133 = vector.load %arg8[%c0_131, %c0_132] : memref<72x256xf32, #tpu.memory_space<vmem>>, vector<72x256xf32>
    %cst_133 = arith.constant dense<0.000000e+00> : vector<16x256xf32>
    %134 = tpu.matmul %132, %133, %cst_133 {dimension_numbers = #tpu.dot_dimension_numbers<[1], [0], [0], [1], [0, 0, 1, 1], [], []>} : vector<16x72xf32>, vector<72x256xf32>, vector<16x256xf32> -> vector<16x256xf32>
    %c0_134 = arith.constant 0 : index
    %c0_135 = arith.constant 0 : index
    %135 = vector.load %arg4[%c0_134, %c0_135] : memref<16x1xf32, #tpu.memory_space<vmem>>, vector<16x1xf32>
    %136 = vector.broadcast %135 : vector<16x1xf32> to vector<16x256xf32>
    %137 = arith.mulf %134, %136 : vector<16x256xf32>
    %c0_136 = arith.constant 0 : index
    %c0_137 = arith.constant 0 : index
    %138 = vector.load %arg5[%c0_136, %c0_137] : memref<16x1xf32, #tpu.memory_space<vmem>>, vector<16x1xf32>
    %139 = vector.broadcast %138 : vector<16x1xf32> to vector<16x256xf32>
    %140 = arith.addf %137, %139 : vector<16x256xf32>
    %cst_138 = arith.constant 0.000000e+00 : f32
    %141 = vector.broadcast %cst_138 : f32 to vector<16x256xf32>
    %142 = arith.maximumf %140, %141 : vector<16x256xf32>
    %143 = arith.truncf %142 : vector<16x256xf32> to vector<16x256xbf16>
    %c1_139 = arith.constant 1 : index
    %c0_140 = arith.constant 0 : index
    %c0_141 = arith.constant 0 : index
    %144 = vector.load %arg6[%c1_139, %c0_140, %c0_141] : memref<2x16x256xbf16, #tpu.memory_space<vmem>>, vector<1x16x256xbf16>
    %145 = vector.shape_cast %144 : vector<1x16x256xbf16> to vector<16x256xbf16>
    %146 = vector.shape_cast %143 : vector<16x256xbf16> to vector<1x16x256xbf16>
    tpu.vector_store %arg6[%c1_139, %c0_140, %c0_141], %146 {strides = array<i32>} : memref<2x16x256xbf16, #tpu.memory_space<vmem>>, vector<1x16x256xbf16>,
    return
  }
  func.func @transform_0(%arg0: i32) -> (i32, i32, i32) {
    %c0_i32 = arith.constant 0 : i32
    %c0_i32_0 = arith.constant 0 : i32
    %c0_i32_1 = arith.constant 0 : i32
    return %arg0, %c0_i32, %c0_i32_0 : i32, i32, i32
  }
  func.func @transform_1(%arg0: i32) -> (i32, i32) {
    %c0_i32 = arith.constant 0 : i32
    %c0_i32_0 = arith.constant 0 : i32
    %c0_i32_1 = arith.constant 0 : i32
    return %c0_i32, %c0_i32_0 : i32, i32
  }
  func.func @transform_2(%arg0: i32) -> (i32, i32, i32) {
    %c0_i32 = arith.constant 0 : i32
    %c0_i32_0 = arith.constant 0 : i32
    %c0_i32_1 = arith.constant 0 : i32
    %c0_i32_2 = arith.constant 0 : i32
    return %c0_i32, %c0_i32_0, %c0_i32_1 : i32, i32, i32
  }
  func.func @transform_3(%arg0: i32) -> (i32, i32) {
    %c0_i32 = arith.constant 0 : i32
    %c0_i32_0 = arith.constant 0 : i32
    %c0_i32_1 = arith.constant 0 : i32
    return %c0_i32, %c0_i32_0 : i32, i32
  }
  func.func @transform_4(%arg0: i32) -> (i32, i32) {
    %c0_i32 = arith.constant 0 : i32
    %c0_i32_0 = arith.constant 0 : i32
    %c0_i32_1 = arith.constant 0 : i32
    return %c0_i32, %c0_i32_0 : i32, i32
  }
  func.func @transform_5(%arg0: i32) -> (i32, i32, i32) {
    %c0_i32 = arith.constant 0 : i32
    %c0_i32_0 = arith.constant 0 : i32
    %c0_i32_1 = arith.constant 0 : i32
    return %arg0, %c0_i32, %c0_i32_0 : i32, i32, i32
  }
}

</mosaic_0001>

<bundles_post_ra>
// kernel: duc_forward.1
= control target key start
LH: loop header
LB: loop body
LE: loop exit
PB: predicated region body
PF: predicated region fallthrough
CT: control target
= control target key end

     0   :  { %v63_v0 = vlaneseq  ;;  %vm25_vm0 = vcmask 273408   ;;  %v1103_v3 = vmov 0.0   ;;  %s1105_s9 = smov 2   ;;  %s1106_s10 = smov 1   ;;  %vm54_vm1 = vcmask 1043592   ;;  %s1527_s0 = inlined_call_operand.vmem [shape: f32[2,4,256], index: 0, kind: input, shape index: {}]   ;;  %s1528_s2 = inlined_call_operand.vmem [shape: f32[9,1,256], index: 2, kind: input, shape index: {}]   ;;  %s1529_s3 = inlined_call_operand.vmem [shape: f32[16,1], index: 3, kind: input, shape index: {}]   ;;  %s1530_s4 = inlined_call_operand.vmem [shape: f32[16,1], index: 4, kind: input, shape index: {}]   ;;  %s1531_s1 = inlined_call_operand.vmem [shape: f32[16,72], index: 1, kind: input, shape index: {}]   ;;  %s1532_s5 = inlined_call_operand.vmem [shape: bf16[2,16,256], index: 5, kind: output, shape index: {}]  }
   0x1   :  { %v45_v1 = vld [vmem:[%s1527_s0] sm:$0xff]  ;;  %v1032_v2 = vld [vmem:[%s1527_s0 + $0x8] sm:$0xff]  ;;  %24 = vst [vmem:[#allocation2] sm:$0xff] %v1103_v3  ;;  %26 = vst.msk [vmem:[#allocation2 + $0x8] sm:$0xf] %vm25_vm0, %v1103_v3  ;;  %481 = vmatprep.mubr.f32.mxu0 %v1103_v3  ;;  %952 = vmatprep.mubr.f32.mxu1 %v1103_v3  ;;  %s1104_s0 = smov 17  }
   0x2   :  { %27 = vst [vmem:[#allocation3] sm:$0xff] %v1103_v3  ;;  %28 = vst [vmem:[#allocation3 + $0x8] sm:$0xff] %v1103_v3  ;;  %47 = vrot.lane.b32.xlu0 %v45_v1, %s1104_s0  ;;  %547 = vrot.lane.b32.xlu1 %v1032_v2, %s1104_s0  ;;  %v64_v4 = vshrl.u32 %v63_v0, 7  ;;  %v1021_v5 = vld [vmem:[%s1528_s2 + $0x4] sm:$0x3]  ;;  %s1107_s15 = smov 16  }
   0x3   :  { %29 = vst [vmem:[#allocation3 + $0x10] sm:$0xff] %v1103_v3  ;;  %30 = vst [vmem:[#allocation3 + $0x18] sm:$0xff] %v1103_v3  ;;  %v1020_v6 = vld [vmem:[%s1528_s2 + $0x2] sm:$0x3]  ;;  %v1023_v9 = vld [vmem:[%s1528_s2 + $0x8] sm:$0x3] }
   0x4   :  { %31 = vst [vmem:[#allocation3 + $0x20] sm:$0xff] %v1103_v3  ;;  %32 = vst [vmem:[#allocation3 + $0x28] sm:$0xff] %v1103_v3  ;;  %v1187_v7 = vsub.s32 0, %v64_v4  ;;  %v1189_v8 = vsub.s32 1, %v64_v4  ;;  %v1022_v10 = vld [vmem:[%s1528_s2 + $0x6] sm:$0x3] }
   0x5   :  { %33 = vst [vmem:[#allocation3 + $0x30] sm:$0xff] %v1103_v3  ;;  %34 = vst [vmem:[#allocation3 + $0x38] sm:$0xff] %v1103_v3  ;;  %v1033_v15 = vld [vmem:[%s1528_s2 + $0x2] sm:$0x3]  ;;  %v1024_v20 = vld [vmem:[%s1528_s2 + $0xa] sm:$0x3] }
   0x6   :  { %35 = vst [vmem:[#allocation3 + $0x40] sm:$0xff] %v1103_v3  ;;  %36 = vst [vmem:[#allocation3 + $0x48] sm:$0xff] %v1103_v3  ;;  %v126_v11 = vrot.slane %v1021_v5, %v1187_v7  ;;  %v130_v12 = vrot.slane %v1021_v5, %v1189_v8  ;;  %v87_v13 = vrot.slane %v1020_v6, %v1187_v7  ;;  %v1026_v29 = vld [vmem:[%s1528_s2 + $0xe] sm:$0x3]  ;;  %v1025_v30 = vld [vmem:[%s1528_s2 + $0xc] sm:$0x3] }
   0x7   :  { %37 = vst [vmem:[#allocation3 + $0x50] sm:$0xff] %v1103_v3  ;;  %38 = vst [vmem:[#allocation3 + $0x58] sm:$0xff] %v1103_v3  ;;  %v91_v14 = vrot.slane %v1020_v6, %v1189_v8  ;;  %v204_v16 = vrot.slane %v1023_v9, %v1187_v7  ;;  %v208_v17 = vrot.slane %v1023_v9, %v1189_v8  ;;  %v1035_v37 = vld [vmem:[%s1528_s2 + $0x6] sm:$0x3]  ;;  %v1034_v38 = vld [vmem:[%s1528_s2 + $0x4] sm:$0x3] }
   0x8   :  { %39 = vst [vmem:[#allocation3 + $0x60] sm:$0xff] %v1103_v3  ;;  %40 = vst [vmem:[#allocation3 + $0x68] sm:$0xff] %v1103_v3  ;;  %v165_v18 = vrot.slane %v1022_v10, %v1187_v7  ;;  %v169_v19 = vrot.slane %v1022_v10, %v1189_v8  ;;  %v131_v21 = vcombine.low %v126_v11, %v130_v12  ;;  %v1037_v42 = vld [vmem:[%s1528_s2 + $0xa] sm:$0x3]  ;;  %v61_v43 = vld [vmem:[%s1528_s2] sm:$0x3] }
   0x9   :  { %41 = vst [vmem:[#allocation3 + $0x70] sm:$0xff] %v1103_v3  ;;  %42 = vst [vmem:[#allocation3 + $0x78] sm:$0xff] %v1103_v3  ;;  %v92_v22 = vcombine.low %v87_v13, %v91_v14  ;;  %v209_v23 = vcombine.low %v204_v16, %v208_v17  ;;  %v581_v24 = vrot.slane %v1033_v15, %v1187_v7  ;;  %v556_v44 = vld [vmem:[%s1528_s2] sm:$0x3]  ;;  %s1108_s26 = smov 18   ;;  %s1109_s29 = smov 33  }
   0xa   :  { %43 = vst [vmem:[#allocation3 + $0x80] sm:$0xff] %v1103_v3  ;;  %44 = vst [vmem:[#allocation3 + $0x88] sm:$0xff] %v1103_v3  ;;  %v585_v25 = vrot.slane %v1033_v15, %v1189_v8  ;;  %132 = vrot.lane.b32.xlu1 %v131_v21, %s1105_s9  ;;  %v170_v26 = vcombine.low %v165_v18, %v169_v19  ;;  %v242_v27 = vrot.slane %v1024_v20, %v1187_v7  ;;  %v1036_v48 = vld [vmem:[%s1528_s2 + $0x8] sm:$0x3]  ;;  %s1110_s30 = smov 32   ;;  %vm55_vm2 = vcmask 1047556  }
   0xb   :  { %93 = vrot.lane.b32.xlu0 %v92_v22, %s1106_s10  ;;  %v246_v28 = vrot.slane %v1024_v20, %v1189_v8  ;;  %v320_v32 = vrot.slane %v1026_v29, %v1187_v7  ;;  %v324_v33 = vrot.slane %v1026_v29, %v1189_v8  ;;  %v281_v35 = vrot.slane %v1025_v30, %v1187_v7  ;;  %v1038_v59 = vld [vmem:[%s1528_s2 + $0xc] sm:$0x3]  ;;  %v1027_v61 = vld [vmem:[%s1528_s2 + $0x10] sm:$0x3]  ;;  %v1039_v9 = vld [vmem:[%s1528_s2 + $0xe] sm:$0x3] }
   0xc   :  { %v586_v31 = vcombine.low %v581_v24, %v585_v25  ;;  %v285_v36 = vrot.slane %v1025_v30, %v1189_v8  ;;  %v653_v40 = vrot.slane %v1035_v37, %v1187_v7  ;;  %v657_v41 = vrot.slane %v1035_v37, %v1189_v8  ;;  %v1040_v6 = vld [vmem:[%s1528_s2 + $0x10] sm:$0x3]  ;;  %vm1287_vm5 = vmor %vm55_vm2, %vm54_vm1  ;;  %s1112_s2 = smov 126   ;;  %s1115_s16 = smov 111  }
   0xd   :  { %v247_v34 = vcombine.low %v242_v27, %v246_v28  ;;  %v325_v39 = vcombine.low %v320_v32, %v324_v33  ;;  %v617_v46 = vrot.slane %v1034_v38, %v1187_v7  ;;  %v621_v47 = vrot.slane %v1034_v38, %v1189_v8  ;;  %s1116_s17 = smov 96   ;;  %s1117_s18 = smov 110  }
   0xe   :  { %210 = vrot.lane.b32.xlu1 %v209_v23, %s1104_s0  ;;  %v286_v45 = vcombine.low %v281_v35, %v285_v36  ;;  %v725_v49 = vrot.slane %v1037_v42, %v1187_v7  ;;  %v66_v50 = vrot.slane %v61_v43, %v1187_v7  ;;  %v70_v51 = vrot.slane %v61_v43, %v1189_v8  ;;  %s1118_s19 = smov 95   ;;  %s1119_s20 = smov 94  }
   0xf   :  { %171 = vrot.lane.b32.xlu0 %v170_v26, %s1107_s15  ;;  %v561_v52 = vrot.slane %v556_v44, %v1187_v7  ;;  %v658_v53 = vcombine.low %v653_v40, %v657_v41  ;;  %v729_v54 = vrot.slane %v1037_v42, %v1189_v8  ;;  %v689_v55 = vrot.slane %v1036_v48, %v1187_v7 }
  0x10   :  { %v565_v56 = vrot.slane %v556_v44, %v1189_v8  ;;  %v622_v57 = vcombine.low %v617_v46, %v621_v47  ;;  %v693_v58 = vrot.slane %v1036_v48, %v1189_v8  ;;  %v71_v60 = vcombine.low %v66_v50, %v70_v51 }
  0x11   :  { %v730_v63 = vcombine.low %v725_v49, %v729_v54  ;;  %v761_v0 = vrot.slane %v1038_v59, %v1187_v7  ;;  %v765_v1 = vrot.slane %v1038_v59, %v1189_v8  ;;  %v359_v4 = vrot.slane %v1027_v61, %v1187_v7 }
  0x12   :  { %587 = vrot.lane.b32.xlu1 %v586_v31, %s1106_s10  ;;  %v1266_v62 = vcombine.low %v561_v52, %v565_v56  ;;  %v694_v2 = vcombine.low %v689_v55, %v693_v58  ;;  %v363_v5 = vrot.slane %v1027_v61, %v1189_v8  ;;  %v833_v11 = vrot.slane %v1040_v6, %v1187_v7 }
  0x13   :  { %248 = vrot.lane.b32.xlu0 %v247_v34, %s1108_s26  ;;  %v766_v10 = vcombine.low %v761_v0, %v765_v1  ;;  %v837_v12 = vrot.slane %v1040_v6, %v1189_v8  ;;  %v797_v14 = vrot.slane %v1039_v9, %v1187_v7  ;;  %v801_v15 = vrot.slane %v1039_v9, %v1189_v8 }
  0x14   :  { %v364_v13 = vcombine.low %v359_v4, %v363_v5  ;;  %vm50_vm3 = vcmask 138240   ;;  %vm58_vm4 = vcmask 134144   ;;  %vm96_vm6 = vcmask 7168  }
  0x15   :  { %v838_v16 = vcombine.low %v833_v11, %v837_v12  ;;  %v802_v17 = vcombine.low %v797_v14, %v801_v15  ;;  %vm174_vm7 = vcmask 130048   ;;  %vm251_vm8 = vcmask 146432  }
  0x16   :  { %326 = vrot.lane.b32.xlu1 %v325_v39, %s1109_s29  ;;  %vm135_vm9 = vcmask 15360   ;;  %vm290_vm10 = vcmask 261120   ;;  %vm368_vm11 = vcmask 277504   ;;  %vm329_vm12 = vcmask 269312  }
  0x17   :  { %287 = vrot.lane.b32.xlu0 %v286_v45, %s1110_s30  ;;  %vm111_vm13 = vcmask 1039360   ;;  %vm150_vm14 = vcmask 1031168   ;;  %vm305_vm15 = vcmask 785408   ;;  %vm189_vm0 = vcmask 916480  }
  0x18   :  { %vm344_vm1 = vcmask 777216   ;;  %vm227_vm2 = vcmask 908288  }
  0x1a   :  { %659 = vrot.lane.b32.xlu1 %v658_v53, %s1107_s15  ;;  %s1114_s15 = smov 112  }
  0x1b   :  { %623 = vrot.lane.b32.xlu0 %v622_v57, %s1105_s9  ;;  %s1111_s9 = smov 34  }
  0x1e   :  { %731 = vrot.lane.b32.xlu1 %v730_v63, %s1108_s26 }
  0x1f   :  { %695 = vrot.lane.b32.xlu0 %v694_v2, %s1104_s0  ;;  %s1113_s0 = smov 127  }
  0x22   :  { %767 = vrot.lane.b32.xlu1 %v766_v10, %s1110_s30 }
  0x23   :  { %365 = vrot.lane.b32.xlu0 %v364_v13, %s1111_s9 }
  0x26   :  { %839 = vrot.lane.b32.xlu1 %v838_v16, %s1111_s9 }
  0x27   :  { %803 = vrot.lane.b32.xlu0 %v802_v17, %s1109_s29 }
  0x74   :  { %v48_v18 = vpop.permute.xlu0 %47  ;;  %v548_v20 = vpop.permute.xlu1 %547 }
  0x75   :  { %v49_v7 = vrot.slane %v48_v18, 4  ;;  %v549_v21 = vrot.slane %v548_v20, 4 }
  0x77   :  { %v51_v8 = vsel %vm50_vm3, %v49_v7, %v48_v18  ;;  %59 = vst.msk [vmem:[#allocation2 + $0x8] sm:$0xf] %vm58_vm4, %v49_v7  ;;  %v550_v24 = vsel %vm50_vm3, %v549_v21, %v548_v20 }
  0x78   :  { %57 = vst.msk [vmem:[#allocation2] sm:$0xff] %vm1287_vm5, %v51_v8 }
  0x7c   :  { %v1295_v22 = vpop.permute.xlu1 %132 }
  0x7d   :  { %v94_v23 = vpop.permute.xlu0 %93  ;;  %v134_v25 = vrot.slane %v1295_v22, 4 }
  0x7e   :  { %v95_v26 = vrot.slane %v94_v23, 4  ;;  %v235_v27 = vld [vmem:[#allocation2 + $0x8] sm:$0xf] }
  0x7f   :  { %v274_v28 = vld [vmem:[#allocation2 + $0x8] sm:$0xf]  ;;  %v1299_v30 = vld [vmem:[#allocation2] sm:$0xff]  ;;  %v136_v13 = vsel %vm135_vm9, %v134_v25, %v1295_v22 }
  0x80   :  { %v313_v29 = vld [vmem:[#allocation2 + $0x8] sm:$0xf]  ;;  %v1305_v35 = vpop.permute.xlu1 %210  ;;  %553 = vst.msk [vmem:[#allocation2] sm:$0xff] %vm1287_vm5, %v550_v24  ;;  %v73_v39 = vmul.f32 %v71_v60, %v1299_v30  ;;  %v139_v18 = vmul.f32 %v136_v13, %v1299_v30  ;;  %vm410_vm5 = vcmask 588800  }
  0x81   :  { %v1301_v31 = vld [vmem:[#allocation2 + $0x8] sm:$0xf]  ;;  %v172_v38 = vpop.permute.xlu0 %171  ;;  %v212_v44 = vrot.slane %v1305_v35, 4 }
  0x82   :  { %v119_v32 = vld [vmem:[#allocation2 + $0x8] sm:$0xf]  ;;  %v173_v41 = vrot.slane %v172_v38, 4  ;;  %v75_v42 = vcombine.high %v73_v39, %v73_v39  ;;  %77 = vst [vmem:[#allocation3] sm:$0xf] %v73_v39 }
  0x83   :  { %v140_v33 = vmul.f32 %v134_v25, %v119_v32  ;;  %v80_v34 = vld [vmem:[#allocation2 + $0x8] sm:$0xf]  ;;  %v213_v7 = vsel %vm50_vm3, %v212_v44, %v1305_v35 }
  0x84   :  { %v197_v36 = vld [vmem:[#allocation2 + $0x8] sm:$0xf]  ;;  %v101_v40 = vmul.f32 %v95_v26, %v80_v34  ;;  %v1314_v45 = vpop.permute.xlu1 %587  ;;  %78 = vst [vmem:[#allocation3 + $0x8] sm:$0xf] %v75_v42  ;;  %v175_v4 = vsel %vm174_vm7, %v173_v41, %v172_v38  ;;  %v216_v22 = vmul.f32 %v213_v7, %v1299_v30 }
  0x85   :  { %v158_v37 = vld [vmem:[#allocation2 + $0x8] sm:$0xf]  ;;  %148 = vrot.lane.b32.xlu0 %v140_v33, %s1112_s2  ;;  %v249_v46 = vpop.permute.xlu0 %248  ;;  %v217_v48 = vmul.f32 %v212_v44, %v197_v36  ;;  %v178_v5 = vmul.f32 %v175_v4, %v1299_v30  ;;  %v589_v34 = vrot.slane %v1314_v45, 4 }
  0x86   :  { %554 = vst.msk [vmem:[#allocation2 + $0x8] sm:$0xf] %vm58_vm4, %v549_v21  ;;  %v179_v43 = vmul.f32 %v173_v41, %v158_v37  ;;  %109 = vrot.lane.b32.xlu1 %v101_v40, %s1113_s0  ;;  %v250_v49 = vrot.slane %v249_v46, 4  ;;  %v220_v32 = vcombine.high %v216_v22, %v216_v22  ;;  %vm266_vm4 = vcmask 900096  }
  0x87   :  { %v1317_v47 = vld [vmem:[#allocation2] sm:$0xff] }
  0x88   :  { %v327_v50 = vpop.permute.xlu1 %326  ;;  %v568_v52 = vmul.f32 %v1317_v47, %v1266_v62  ;;  %v256_v59 = vmul.f32 %v250_v49, %v235_v27  ;;  %v97_v62 = vsel %vm96_vm6, %v95_v26, %v94_v23  ;;  %v252_v10 = vsel %vm251_vm8, %v250_v49, %v249_v46 }
  0x89   :  { %187 = vrot.lane.b32.xlu0 %v179_v43, %s1114_s15  ;;  %v288_v51 = vpop.permute.xlu0 %287  ;;  %v328_v55 = vrot.slane %v327_v50, 4  ;;  %v1324_v58 = vld [vmem:[#allocation3] sm:$0xff]  ;;  %v100_v0 = vmul.f32 %v97_v62, %v1299_v30  ;;  %v255_v14 = vmul.f32 %v252_v10, %v1299_v30  ;;  %v143_v27 = vcombine.high %v139_v18, %v139_v18 }
  0x8a   :  { %v289_v53 = vrot.slane %v288_v51, 4  ;;  %v570_v54 = vcombine.high %v568_v52, %v568_v52  ;;  %572 = vst [vmem:[#allocation3] sm:$0xf] %v568_v52  ;;  %v590_v62 = vsel %vm96_vm6, %v589_v34, %v1314_v45 }
  0x8b   :  { %v1322_v57 = vld [vmem:[#allocation3 + $0x8] sm:$0xff]  ;;  %v334_v63 = vmul.f32 %v328_v55, %v313_v29  ;;  %v330_v23 = vsel %vm329_vm12, %v328_v55, %v327_v50  ;;  %v104_v26 = vcombine.high %v100_v0, %v100_v0  ;;  %v182_v29 = vcombine.high %v178_v5, %v178_v5 }
  0x8c   :  { %v295_v56 = vmul.f32 %v289_v53, %v274_v28  ;;  %v1326_v60 = vpop.permute.xlu1 %659  ;;  %573 = vst [vmem:[#allocation3 + $0x8] sm:$0xf] %v570_v54  ;;  %v291_v16 = vsel %vm290_vm10, %v289_v53, %v288_v51  ;;  %v333_v25 = vmul.f32 %v330_v23, %v1299_v30  ;;  %v259_v36 = vcombine.high %v255_v14, %v255_v14  ;;  %v511_v23 = vld [vmem:[%s1530_s4 + $0x8] sm:$0xff] }
  0x8d   :  { %225 = vrot.lane.b32.xlu0 %v217_v48, %s1115_s16  ;;  %v1328_v61 = vpop.permute.xlu0 %623  ;;  %v294_v20 = vmul.f32 %v291_v16, %v1299_v30  ;;  %v611_v39 = vld [vmem:[#allocation2 + $0x8] sm:$0xf]  ;;  %v661_v40 = vrot.slane %v1326_v60, 4 }
  0x8e   :  { %303 = vrot.lane.b32.xlu1 %v295_v56, %s1116_s17  ;;  %v625_v35 = vrot.slane %v1328_v61, 4  ;;  %v755_v42 = vld [vmem:[#allocation2 + $0x8] sm:$0xf] }
  0x8f   :  { %v298_v28 = vcombine.high %v294_v20, %v294_v20  ;;  %v647_v48 = vld [vmem:[#allocation2 + $0x8] sm:$0xf]  ;;  %v662_v56 = vsel %vm174_vm7, %v661_v40, %v1326_v60 }
  0x90   :  { %v1334_v1 = vpop.permute.xlu1 %731  ;;  %v630_v41 = vmul.f32 %v625_v35, %v611_v39  ;;  %v626_v44 = vsel %vm135_vm9, %v625_v35, %v1328_v61  ;;  %v666_v49 = vmul.f32 %v661_v40, %v647_v48  ;;  %v683_v52 = vld [vmem:[#allocation2 + $0x8] sm:$0xf] }
  0x91   :  { %264 = vrot.lane.b32.xlu0 %v256_v59, %s1117_s18  ;;  %v1336_v2 = vpop.permute.xlu0 %695  ;;  %v629_v50 = vmul.f32 %v626_v44, %v1317_v47  ;;  %v733_v53 = vrot.slane %v1334_v1, 4  ;;  %v719_v59 = vld [vmem:[#allocation2 + $0x8] sm:$0xf] }
  0x92   :  { %342 = vrot.lane.b32.xlu1 %v334_v63, %s1118_s19  ;;  %v697_v46 = vrot.slane %v1336_v2, 4  ;;  %v665_v63 = vmul.f32 %v662_v56, %v1317_v47  ;;  %v827_v7 = vld [vmem:[#allocation2 + $0x8] sm:$0xf] }
  0x93   :  { %v738_v61 = vmul.f32 %v733_v53, %v719_v59  ;;  %v734_v60 = vsel %vm251_vm8, %v733_v53, %v1334_v1 }
  0x94   :  { %v1342_v6 = vpop.permute.xlu1 %767  ;;  %v698_v51 = vsel %vm50_vm3, %v697_v46, %v1336_v2  ;;  %v702_v54 = vmul.f32 %v697_v46, %v683_v52  ;;  %v593_v2 = vmul.f32 %v590_v62, %v1317_v47  ;;  %v669_v4 = vcombine.high %v665_v63, %v665_v63 }
  0x95   :  { %105 = vrot.lane.b32.xlu0 %v100_v0, %s1113_s0  ;;  %v366_v9 = vpop.permute.xlu0 %365  ;;  %v769_v38 = vrot.slane %v1342_v6, 4  ;;  %v701_v55 = vmul.f32 %v698_v51, %v1317_v47  ;;  %v633_v0 = vcombine.high %v629_v50, %v629_v50  ;;  %vm383_vm3 = vcmask 769024  }
  0x96   :  { %v367_v11 = vrot.slane %v366_v9, 4  ;;  %v597_v1 = vcombine.high %v593_v2, %v593_v2 }
  0x97   :  { %v774_v43 = vmul.f32 %v769_v38, %v755_v42  ;;  %v705_v45 = vcombine.high %v701_v55, %v701_v55  ;;  %v770_v13 = vsel %vm290_vm10, %v769_v38, %v1342_v6 }
  0x98   :  { %v373_v12 = vmul.f32 %v367_v11, %v1301_v31  ;;  %v1352_v15 = vpop.permute.xlu1 %839  ;;  %v369_v21 = vsel %vm368_vm11, %v367_v11, %v366_v9  ;;  %v337_v31 = vcombine.high %v333_v25, %v333_v25 }
  0x99   :  { %183 = vrot.lane.b32.xlu0 %v178_v5, %s1114_s15  ;;  %v841_v17 = vrot.slane %v1352_v15, 4  ;;  %v372_v24 = vmul.f32 %v369_v21, %v1299_v30  ;;  %v575_v30 = vld [vmem:[#allocation2 + $0x8] sm:$0xf]  ;;  %v737_v5 = vmul.f32 %v734_v60, %v1317_v47  ;;  %v804_v9 = vpop.permute.xlu0 %803 }
  0x9a   :  { %381 = vrot.lane.b32.xlu1 %v373_v12, %s1119_s20  ;;  %v594_v37 = vmul.f32 %v589_v34, %v575_v30  ;;  %v805_v10 = vrot.slane %v804_v9, 4  ;;  %v791_v12 = vld [vmem:[#allocation2 + $0x8] sm:$0xf] }
  0x9b   :  { %v842_v19 = vsel %vm368_vm11, %v841_v17, %v1352_v15  ;;  %v376_v33 = vcombine.high %v372_v24, %v372_v24  ;;  %v741_v11 = vcombine.high %v737_v5, %v737_v5  ;;  %v846_v6 = vmul.f32 %v841_v17, %v827_v7  ;;  %v494_v15 = vld [vmem:[%s1529_s3] sm:$0xff]  ;;  %v495_v17 = vld [vmem:[%s1529_s3 + $0x8] sm:$0xff] }
  0x9c   :  { %v1366_v8 = vmul.f32 %v842_v19, %v1317_v47  ;;  %v806_v16 = vsel %vm329_vm12, %v805_v10, %v804_v9 }
  0x9d   :  { %260 = vrot.lane.b32.xlu0 %v255_v14, %s1117_s18  ;;  %v810_v14 = vmul.f32 %v805_v10, %v791_v12  ;;  %v809_v19 = vmul.f32 %v806_v16, %v1317_v47 }
  0x9e   :  { %144 = vrot.lane.b32.xlu1 %v139_v18, %s1112_s2  ;;  %v773_v18 = vmul.f32 %v770_v13, %v1317_v47  ;;  %v1120_v47 = vmov 0  }
  0x9f   :  { %v813_v21 = vcombine.high %v809_v19, %v809_v19  ;;  %1102 = vset.pattern.permute.xlu1 %v1120_v47  ;;  %1101 = vset.pattern.permute.xlu0 %v1120_v47 }
  0xa1   :  { %299 = vrot.lane.b32.xlu0 %v294_v20, %s1116_s17  ;;  %v777_v20 = vcombine.high %v773_v18, %v773_v18 }
  0xa2   :  { %221 = vrot.lane.b32.xlu1 %v216_v22, %s1115_s16  ;;  %v849_v22 = vcombine.high %v1366_v8, %v1366_v8 }
  0xa5   :  { %377 = vrot.lane.b32.xlu0 %v372_v24, %s1119_s20 }
  0xa6   :  { %338 = vrot.lane.b32.xlu1 %v333_v25, %s1118_s19 }
  0xa9   :  { %107 = vrot.lane.b32.xlu0 %v104_v26, %s1113_s0 }
  0xaa   :  { %146 = vrot.lane.b32.xlu1 %v143_v27, %s1112_s2 }
  0xad   :  { %301 = vrot.lane.b32.xlu0 %v298_v28, %s1116_s17 }
  0xae   :  { %185 = vrot.lane.b32.xlu1 %v182_v29, %s1114_s15 }
  0xb1   :  { %340 = vrot.lane.b32.xlu0 %v337_v31, %s1118_s19 }
  0xb2   :  { %223 = vrot.lane.b32.xlu1 %v220_v32, %s1115_s16 }
  0xb5   :  { %379 = vrot.lane.b32.xlu0 %v376_v33, %s1119_s20 }
  0xb6   :  { %262 = vrot.lane.b32.xlu1 %v259_v36, %s1117_s18 }
  0xb9   :  { %602 = vrot.lane.b32.xlu0 %v594_v37, %s1113_s0 }
  0xba   :  { %638 = vrot.lane.b32.xlu1 %v630_v41, %s1112_s2 }
  0xbd   :  { %782 = vrot.lane.b32.xlu0 %v774_v43, %s1116_s17 }
  0xbe   :  { %674 = vrot.lane.b32.xlu1 %v666_v49, %s1114_s15 }
  0xc1   :  { %634 = vrot.lane.b32.xlu0 %v629_v50, %s1112_s2 }
  0xc2   :  { %710 = vrot.lane.b32.xlu1 %v702_v54, %s1115_s16 }
  0xc5   :  { %706 = vrot.lane.b32.xlu0 %v701_v55, %s1115_s16 }
  0xc6   :  { %746 = vrot.lane.b32.xlu1 %v738_v61, %s1117_s18 }
  0xc9   :  { %636 = vrot.lane.b32.xlu0 %v633_v0, %s1112_s2 }
  0xca   :  { %598 = vrot.lane.b32.xlu1 %v593_v2, %s1113_s0 }
  0xcd   :  { %672 = vrot.lane.b32.xlu0 %v669_v4, %s1114_s15 }
  0xce   :  { %670 = vrot.lane.b32.xlu1 %v665_v63, %s1114_s15 }
  0xd1   :  { %708 = vrot.lane.b32.xlu0 %v705_v45, %s1115_s16 }
  0xd2   :  { %742 = vrot.lane.b32.xlu1 %v737_v5, %s1117_s18 }
  0xd5   :  { %744 = vrot.lane.b32.xlu0 %v741_v11, %s1117_s18 }
  0xd6   :  { %600 = vrot.lane.b32.xlu1 %v597_v1, %s1113_s0 }
  0xd9   :  { %818 = vrot.lane.b32.xlu0 %v810_v14, %s1118_s19 }
  0xda   :  { %778 = vrot.lane.b32.xlu1 %v773_v18, %s1116_s17 }
  0xdd   :  { %814 = vrot.lane.b32.xlu0 %v809_v19, %s1118_s19 }
  0xde   :  { %780 = vrot.lane.b32.xlu1 %v777_v20, %s1116_s17 }
  0xe1   :  { %854 = vrot.lane.b32.xlu0 %v846_v6, %s1119_s20 }
  0xe2   :  { %816 = vrot.lane.b32.xlu1 %v813_v21, %s1118_s19 }
  0xe5   :  { %498 = vperm.xlu0 %1101, %v494_v15  }
  0xe6   :  { %852 = vrot.lane.b32.xlu1 %v849_v22, %s1119_s20 }
  0xe9   :  { %974 = vperm.xlu0 %1101, %v495_v17  }
  0xea   :  { %850 = vrot.lane.b32.xlu1 %v1366_v8, %s1119_s20  ;;  %v510_v8 = vld [vmem:[%s1530_s4] sm:$0xff] }
  0xed   :  { %519 = vperm.xlu0 %1101, %v511_v23  }
  0xee   :  { %503 = vperm.xlu1 %1102, %v495_v17  }
  0xf1   :  { %990 = vperm.xlu0 %1101, %v511_v23  }
  0xf2   :  { %969 = vperm.xlu1 %1102, %v494_v15  }
  0xf6   :  { %514 = vperm.xlu1 %1102, %v510_v8  }
  0xf7   :  { %v149_v24 = vpop.permute.xlu0 %148 }
  0xf8   :  { %v110_v27 = vpop.permute.xlu1 %109 }
  0xfa   :  { %985 = vperm.xlu1 %1102, %v510_v8  }
  0xfb   :  { %v188_v25 = vpop.permute.xlu0 %187 }
  0xff   :  { %v226_v26 = vpop.permute.xlu0 %225 }
 0x100   :  { %v304_v29 = vpop.permute.xlu1 %303 }
 0x103   :  { %v1452_v28 = vpop.permute.xlu0 %264 }
 0x104   :  { %v343_v32 = vpop.permute.xlu1 %342 }
 0x107   :  { %v106_v31 = vpop.permute.xlu0 %105 }
 0x10b   :  { %v184_v33 = vpop.permute.xlu0 %183 }
 0x10c   :  { %v382_v30 = vpop.permute.xlu1 %381 }
 0x10f   :  { %v261_v34 = vpop.permute.xlu0 %260 }
 0x110   :  { %v145_v35 = vpop.permute.xlu1 %144 }
 0x113   :  { %v300_v36 = vpop.permute.xlu0 %299 }
 0x114   :  { %v222_v37 = vpop.permute.xlu1 %221 }
 0x117   :  { %v378_v38 = vpop.permute.xlu0 %377 }
 0x118   :  { %v339_v39 = vpop.permute.xlu1 %338 }
 0x11b   :  { %v108_v40 = vpop.permute.xlu0 %107 }
 0x11c   :  { %v112_v41 = vsel %vm111_vm13, %v106_v31, %v108_v40  ;;  %v113_v42 = vsel %vm111_vm13, %v108_v40, %v110_v27  ;;  %v147_v43 = vpop.permute.xlu1 %146  ;;  %v1491_v40 = vld [vmem:[%s1531_s1 + $0x8] sm:$0xff] }
 0x11d   :  { %116 = vst [vmem:[#allocation3 + $0x10] sm:$0xf] %v112_v41  ;;  %117 = vst [vmem:[#allocation3 + $0x18] sm:$0xf] %v113_v42  ;;  %v151_v44 = vsel %vm150_vm14, %v145_v35, %v147_v43  ;;  %v152_v46 = vsel %vm150_vm14, %v147_v43, %v149_v24  ;;  %v1482_v35 = vld [vmem:[%s1531_s1] sm:$0xff] }
 0x11e   :  { %155 = vst [vmem:[#allocation3 + $0x20] sm:$0xf] %v151_v44  ;;  %156 = vst [vmem:[#allocation3 + $0x28] sm:$0xf] %v152_v46 }
 0x11f   :  { %v302_v48 = vpop.permute.xlu0 %301 }
 0x120   :  { %v306_v49 = vsel %vm305_vm15, %v300_v36, %v302_v48  ;;  %v307_v50 = vsel %vm305_vm15, %v302_v48, %v304_v29  ;;  %v186_v51 = vpop.permute.xlu1 %185 }
 0x121   :  { %310 = vst [vmem:[#allocation3 + $0x60] sm:$0xf] %v306_v49  ;;  %311 = vst [vmem:[#allocation3 + $0x68] sm:$0xf] %v307_v50  ;;  %v190_v52 = vsel %vm189_vm0, %v184_v33, %v186_v51  ;;  %v191_v53 = vsel %vm189_vm0, %v186_v51, %v188_v25 }
 0x122   :  { %194 = vst [vmem:[#allocation3 + $0x30] sm:$0xf] %v190_v52  ;;  %195 = vst [vmem:[#allocation3 + $0x38] sm:$0xf] %v191_v53 }
 0x123   :  { %v341_v54 = vpop.permute.xlu0 %340 }
 0x124   :  { %v345_v55 = vsel %vm344_vm1, %v339_v39, %v341_v54  ;;  %v346_v56 = vsel %vm344_vm1, %v341_v54, %v343_v32  ;;  %v395_v59 = vld [vmem:[#allocation3 + $0x18] sm:$0xff]  ;;  %v394_v61 = vld [vmem:[#allocation3 + $0x10] sm:$0xff]  ;;  %v224_v0 = vpop.permute.xlu1 %223 }
 0x125   :  { %349 = vst [vmem:[#allocation3 + $0x70] sm:$0xf] %v345_v55  ;;  %350 = vst [vmem:[#allocation3 + $0x78] sm:$0xf] %v346_v56  ;;  %v1051_v62 = vpack.c.bf16 %v395_v59, %v1322_v57  ;;  %v1053_v63 = vpack.c.bf16 %v394_v61, %v1324_v58  ;;  %v228_v2 = vsel %vm227_vm2, %v222_v37, %v224_v0  ;;  %v397_v9 = vld [vmem:[#allocation3 + $0x28] sm:$0xff]  ;;  %v396_v1 = vld [vmem:[#allocation3 + $0x20] sm:$0xff] }
 0x126   :  { %v229_v4 = vsel %vm227_vm2, %v224_v0, %v226_v26  ;;  %232 = vst [vmem:[#allocation3 + $0x40] sm:$0xf] %v228_v2  ;;  %v865_v61 = vld [vmem:[#allocation3 + $0x8] sm:$0xff] }
 0x127   :  { %1052 = vmatprep.subr.bf16.mxu0 %v1051_v62  ;;  %v380_v60 = vpop.permute.xlu0 %379  ;;  %233 = vst [vmem:[#allocation3 + $0x48] sm:$0xf] %v229_v4  ;;  %v864_v62 = vld [vmem:[#allocation3] sm:$0xff] }
 0x128   :  { %v384_v5 = vsel %vm383_vm3, %v378_v38, %v380_v60  ;;  %v385_v45 = vsel %vm383_vm3, %v380_v60, %v382_v30  ;;  %1054 = vmatpush1.bf16.msra.mxu0 %v1053_v63  ;;  %v263_v57 = vpop.permute.xlu1 %262  ;;  %v405_v8 = vld [vmem:[#allocation3 + $0x68] sm:$0xff] }
 0x129   :  { %388 = vst [vmem:[#allocation3 + $0x80] sm:$0xf] %v384_v5  ;;  %389 = vst [vmem:[#allocation3 + $0x88] sm:$0xf] %v385_v45  ;;  %v267_v58 = vsel %vm266_vm4, %v261_v34, %v263_v57  ;;  %v268_v10 = vsel %vm266_vm4, %v263_v57, %v1452_v28  ;;  %v399_v12 = vld [vmem:[#allocation3 + $0x38] sm:$0xff]  ;;  %v398_v13 = vld [vmem:[#allocation3 + $0x30] sm:$0xff] }
 0x12a   :  { %271 = vst [vmem:[#allocation3 + $0x50] sm:$0xf] %v267_v58  ;;  %272 = vst [vmem:[#allocation3 + $0x58] sm:$0xf] %v268_v10  ;;  %v1055_v14 = vpack.c.bf16 %v399_v12, %v397_v9  ;;  %v1057_v16 = vpack.c.bf16 %v398_v13, %v396_v1  ;;  %v404_v28 = vld [vmem:[#allocation3 + $0x60] sm:$0xff] }
 0x12b   :  { %v1473_v11 = vpop.permute.xlu0 %602 }
 0x12c   :  { %v639_v18 = vpop.permute.xlu1 %638  ;;  %1056 = vmatprep.subr.bf16.mxu0 %v1055_v14  ;;  %v407_v6 = vld [vmem:[#allocation3 + $0x78] sm:$0xff]  ;;  %v406_v26 = vld [vmem:[#allocation3 + $0x70] sm:$0xff] }
 0x12d   :  { %1058 = vmatpush1.bf16.msra.mxu0 %v1057_v16  ;;  %v400_v47 = vld [vmem:[#allocation3 + $0x40] sm:$0xff]  ;;  %v1063_v25 = vpack.c.bf16 %v407_v6, %v405_v8  ;;  %v1065_v29 = vpack.c.bf16 %v406_v26, %v404_v28 }
 0x12e   :  { %v401_v20 = vld [vmem:[#allocation3 + $0x48] sm:$0xff] }
 0x12f   :  { %v1475_v19 = vpop.permute.xlu0 %782 }
 0x130   :  { %v675_v7 = vpop.permute.xlu1 %674  ;;  %v409_v33 = vld [vmem:[#allocation3 + $0x88] sm:$0xff]  ;;  %v408_v37 = vld [vmem:[#allocation3 + $0x80] sm:$0xff] }
 0x131   :  { %v403_v22 = vld [vmem:[#allocation3 + $0x58] sm:$0xff]  ;;  %v402_v15 = vld [vmem:[#allocation3 + $0x50] sm:$0xff] }
 0x132   :  { %v1059_v17 = vpack.c.bf16 %v403_v22, %v401_v20  ;;  %v1061_v23 = vpack.c.bf16 %v402_v15, %v400_v47 }
 0x133   :  { %v635_v21 = vpop.permute.xlu0 %634 }
 0x134   :  { %v711_v24 = vpop.permute.xlu1 %710  ;;  %1060 = vmatprep.subr.bf16.mxu0 %v1059_v17 }
 0x135   :  { %1062 = vmatpush1.bf16.msra.mxu0 %v1061_v23 }
 0x136   :  { %1064 = vmatprep.subr.bf16.mxu0 %v1063_v25 }
 0x137   :  { %v707_v27 = vpop.permute.xlu0 %706 }
 0x138   :  { %v747_v31 = vpop.permute.xlu1 %746 }
 0x139   :  { %1066 = vmatpush1.bf16.msra.mxu0 %v1065_v29 }
 0x13a   :  { %433 = vmatprep.subr.mxu0 %v409_v33 }
 0x13b   :  { %v637_v32 = vpop.permute.xlu0 %636 }
 0x13c   :  { %v640_v30 = vsel %vm150_vm14, %v635_v21, %v637_v32  ;;  %v641_v34 = vsel %vm150_vm14, %v637_v32, %v639_v18  ;;  %v599_v36 = vpop.permute.xlu1 %598 }
 0x13d   :  { %644 = vst [vmem:[#allocation3 + $0x20] sm:$0xf] %v640_v30  ;;  %645 = vst [vmem:[#allocation3 + $0x28] sm:$0xf] %v641_v34  ;;  %434 = vmatpush1.msra.mxu0 %v408_v37 }
 0x13e   :  { %1028 = vmatmul.mubr.msk.f32.vlgmr.msra.gmra.mrb[0].mxu0 %vm410_vm5, %v1482_v35 }
 0x13f   :  { %v673_v38 = vpop.permute.xlu0 %672  ;;  %487 = vmatprep.mubr.f32.mxu0 %v1103_v3 }
 0x140   :  { %v677_v39 = vsel %vm189_vm0, %v673_v38, %v675_v7  ;;  %v671_v41 = vpop.permute.xlu1 %670 }
 0x141   :  { %681 = vst [vmem:[#allocation3 + $0x38] sm:$0xf] %v677_v39  ;;  %v676_v42 = vsel %vm189_vm0, %v671_v41, %v673_v38 }
 0x142   :  { %680 = vst [vmem:[#allocation3 + $0x30] sm:$0xf] %v676_v42  ;;  %1029 = vmatmul.mubr.msk.f32.gmra.mrb[2].mxu0 %vm410_vm5, %v1491_v40 }
 0x143   :  { %v709_v43 = vpop.permute.xlu0 %708 }
 0x144   :  { %v712_v44 = vsel %vm227_vm2, %v707_v27, %v709_v43  ;;  %v713_v46 = vsel %vm227_vm2, %v709_v43, %v711_v24  ;;  %v743_v48 = vpop.permute.xlu1 %742  ;;  %v869_v9 = vld [vmem:[#allocation3 + $0x28] sm:$0xff]  ;;  %v868_v14 = vld [vmem:[#allocation3 + $0x20] sm:$0xff] }
 0x145   :  { %716 = vst [vmem:[#allocation3 + $0x40] sm:$0xf] %v712_v44  ;;  %717 = vst [vmem:[#allocation3 + $0x48] sm:$0xf] %v713_v46 }
 0x147   :  { %v745_v49 = vpop.permute.xlu0 %744 }
 0x148   :  { %v748_v50 = vsel %vm266_vm4, %v743_v48, %v745_v49  ;;  %v749_v51 = vsel %vm266_vm4, %v745_v49, %v747_v31  ;;  %v601_v52 = vpop.permute.xlu1 %600  ;;  %v871_v60 = vld [vmem:[#allocation3 + $0x38] sm:$0xff] }
 0x149   :  { %752 = vst [vmem:[#allocation3 + $0x50] sm:$0xf] %v748_v50  ;;  %753 = vst [vmem:[#allocation3 + $0x58] sm:$0xf] %v749_v51  ;;  %v604_v53 = vsel %vm111_vm13, %v599_v36, %v601_v52  ;;  %v605_v54 = vsel %vm111_vm13, %v601_v52, %v1473_v11  ;;  %v1071_v10 = vpack.c.bf16 %v871_v60, %v869_v9  ;;  %v870_v11 = vld [vmem:[#allocation3 + $0x30] sm:$0xff] }
 0x14a   :  { %608 = vst [vmem:[#allocation3 + $0x10] sm:$0xf] %v604_v53  ;;  %609 = vst [vmem:[#allocation3 + $0x18] sm:$0xf] %v605_v54  ;;  %v1073_v16 = vpack.c.bf16 %v870_v11, %v868_v14 }
 0x14b   :  { %v819_v55 = vpop.permute.xlu0 %818 }
 0x14c   :  { %v779_v56 = vpop.permute.xlu1 %778  ;;  %v873_v18 = vld [vmem:[#allocation3 + $0x48] sm:$0xff]  ;;  %v872_v22 = vld [vmem:[#allocation3 + $0x40] sm:$0xff] }
 0x14f   :  { %v815_v5 = vpop.permute.xlu0 %814 }
 0x150   :  { %v781_v59 = vpop.permute.xlu1 %780  ;;  %v875_v13 = vld [vmem:[#allocation3 + $0x58] sm:$0xff]  ;;  %v874_v6 = vld [vmem:[#allocation3 + $0x50] sm:$0xff] }
 0x151   :  { %v784_v63 = vsel %vm305_vm15, %v779_v56, %v781_v59  ;;  %v785_v0 = vsel %vm305_vm15, %v781_v59, %v1475_v19  ;;  %v867_v2 = vld [vmem:[#allocation3 + $0x18] sm:$0xff]  ;;  %v866_v4 = vld [vmem:[#allocation3 + $0x10] sm:$0xff]  ;;  %v1075_v20 = vpack.c.bf16 %v875_v13, %v873_v18  ;;  %v1077_v47 = vpack.c.bf16 %v874_v6, %v872_v22 }
 0x152   :  { %788 = vst [vmem:[#allocation3 + $0x60] sm:$0xf] %v784_v63  ;;  %789 = vst [vmem:[#allocation3 + $0x68] sm:$0xf] %v785_v0  ;;  %v1067_v45 = vpack.c.bf16 %v867_v2, %v865_v61  ;;  %v1069_v57 = vpack.c.bf16 %v866_v4, %v864_v62 }
 0x153   :  { %v855_v19 = vpop.permute.xlu0 %854 }
 0x154   :  { %v817_v58 = vpop.permute.xlu1 %816  ;;  %1068 = vmatprep.subr.bf16.mxu1 %v1067_v45 }
 0x155   :  { %v820_v12 = vsel %vm344_vm1, %v815_v5, %v817_v58  ;;  %v821_v1 = vsel %vm344_vm1, %v817_v58, %v819_v55  ;;  %1070 = vmatpush1.bf16.msra.mxu1 %v1069_v57 }
 0x156   :  { %824 = vst [vmem:[#allocation3 + $0x70] sm:$0xf] %v820_v12  ;;  %825 = vst [vmem:[#allocation3 + $0x78] sm:$0xf] %v821_v1  ;;  %1072 = vmatprep.subr.bf16.mxu1 %v1071_v10 }
 0x158   :  { %v853_v7 = vpop.permute.xlu1 %852 }
 0x159   :  { %v857_v21 = vsel %vm383_vm3, %v853_v7, %v855_v19  ;;  %1074 = vmatpush1.bf16.msra.mxu1 %v1073_v16  ;;  %v877_v17 = vld [vmem:[#allocation3 + $0x68] sm:$0xff]  ;;  %v876_v24 = vld [vmem:[#allocation3 + $0x60] sm:$0xff] }
 0x15a   :  { %861 = vst [vmem:[#allocation3 + $0x88] sm:$0xf] %v857_v21  ;;  %1076 = vmatprep.subr.bf16.mxu1 %v1075_v20 }
 0x15c   :  { %v851_v15 = vpop.permute.xlu1 %850 }
 0x15d   :  { %v856_v23 = vsel %vm383_vm3, %v851_v15, %v853_v7  ;;  %1078 = vmatpush1.bf16.msra.mxu1 %v1077_v47  ;;  %v879_v8 = vld [vmem:[#allocation3 + $0x78] sm:$0xff]  ;;  %v878_v25 = vld [vmem:[#allocation3 + $0x70] sm:$0xff] }
 0x15e   :  { %860 = vst [vmem:[#allocation3 + $0x80] sm:$0xf] %v856_v23  ;;  %v1079_v26 = vpack.c.bf16 %v879_v8, %v877_v17  ;;  %v1081_v27 = vpack.c.bf16 %v878_v25, %v876_v24 }
 0x160   :  { %1080 = vmatprep.subr.bf16.mxu1 %v1079_v26 }
 0x161   :  { %1082 = vmatpush1.bf16.msra.mxu1 %v1081_v27  ;;  %v881_v28 = vld [vmem:[#allocation3 + $0x88] sm:$0xff] }
 0x162   :  { %904 = vmatprep.subr.mxu1 %v881_v28 }
 0x164   :  { %v499_v32 = vpop.permute.xlu0 %498 }
 0x165   :  { %v880_v29 = vld [vmem:[#allocation3 + $0x80] sm:$0xff] }
 0x166   :  { %905 = vmatpush1.msra.mxu1 %v880_v29 }
 0x167   :  { %1041 = vmatmul.mubr.msk.f32.vlgmr.msra.gmra.mrb[0].mxu1 %vm410_vm5, %v1482_v35 }
 0x168   :  { %958 = vmatprep.mubr.f32.mxu1 %v1103_v3  ;;  %v975_v30 = vpop.permute.xlu0 %974 }
 0x16b   :  { %1042 = vmatmul.mubr.msk.f32.gmra.mrb[2].mxu1 %vm410_vm5, %v1491_v40 }
 0x16c   :  { %v520_v3 = vpop.permute.xlu0 %519 }
 0x16d   :  { %v504_v31 = vpop.permute.xlu1 %503 }
 0x170   :  { %v991_v45 = vpop.permute.xlu0 %990 }
 0x171   :  { %v970_v33 = vpop.permute.xlu1 %969 }
 0x175   :  { %v515_v38 = vpop.permute.xlu1 %514 }
 0x179   :  { %v986_v61 = vpop.permute.xlu1 %985 }
 0x211   :  { %v483_v34 = vpop.f32.mrb[0].mxu0 }
 0x212   :  { %v506_v36 = vmul.f32 %v499_v32, %v483_v34  ;;  %v485_v37 = vpop.f32.mrb[1].mxu0 }
 0x213   :  { %v507_v39 = vmul.f32 %v499_v32, %v485_v37 }
 0x214   :  { %v522_v41 = vadd.f32 %v515_v38, %v506_v36 }
 0x215   :  { %v523_v42 = vadd.f32 %v515_v38, %v507_v39  ;;  %v489_v43 = vpop.f32.mrb[2].mxu0 }
 0x216   :  { %v526_v44 = vmax.f32 %v522_v41, 0.0  ;;  %v508_v46 = vmul.f32 %v504_v31, %v489_v43  ;;  %v491_v35 = vpop.f32.mrb[3].mxu0 }
 0x217   :  { %v527_v48 = vmax.f32 %v523_v42, 0.0  ;;  %v509_v49 = vmul.f32 %v504_v31, %v491_v35 }
 0x218   :  { %v524_v50 = vadd.f32 %v520_v3, %v508_v46 }
 0x219   :  { %v1047_v40 = vpack.c.bf16 %v527_v48, %v526_v44  ;;  %v525_v51 = vadd.f32 %v520_v3, %v509_v49 }
 0x21a   :  { %v528_v52 = vmax.f32 %v524_v50, 0.0 }
 0x21b   :  { %542 = vst [vmem:[%s1532_s5] sm:$0xff] %v1047_v40  ;;  %v529_v53 = vmax.f32 %v525_v51, 0.0 }
 0x21d   :  { %v1048_v54 = vpack.c.bf16 %v529_v53, %v528_v52 }
 0x21f   :  { %543 = vst [vmem:[%s1532_s5 + $0x8] sm:$0xff] %v1048_v54 }
 0x23a   :  { %v954_v55 = vpop.f32.mrb[0].mxu1 }
 0x23b   :  { %v977_v56 = vmul.f32 %v970_v33, %v954_v55  ;;  %v956_v59 = vpop.f32.mrb[1].mxu1 }
 0x23c   :  { %v978_v62 = vmul.f32 %v970_v33, %v956_v59 }
 0x23d   :  { %v993_v63 = vadd.f32 %v986_v61, %v977_v56 }
 0x23e   :  { %v994_v0 = vadd.f32 %v986_v61, %v978_v62  ;;  %v960_v2 = vpop.f32.mrb[2].mxu1 }
 0x23f   :  { %v997_v4 = vmax.f32 %v993_v63, 0.0  ;;  %v979_v60 = vmul.f32 %v975_v30, %v960_v2  ;;  %v962_v5 = vpop.f32.mrb[3].mxu1 }
 0x240   :  { %v998_v57 = vmax.f32 %v994_v0, 0.0  ;;  %v980_v9 = vmul.f32 %v975_v30, %v962_v5 }
 0x241   :  { %v995_v58 = vadd.f32 %v991_v45, %v979_v60 }
 0x242   :  { %v1049_v10 = vpack.c.bf16 %v998_v57, %v997_v4  ;;  %v996_v11 = vadd.f32 %v991_v45, %v980_v9 }
 0x243   :  { %v999_v12 = vmax.f32 %v995_v58, 0.0 }
 0x244   :  { %1045 = vst [vmem:[%s1532_s5 + $0x10] sm:$0xff] %v1049_v10  ;;  %v1000_v1 = vmax.f32 %v996_v11, 0.0 }
 0x246   :  { %v1050_v13 = vpack.c.bf16 %v1000_v1, %v999_v12 }
 0x248   :  { %1046 = vst [vmem:[%s1532_s5 + $0x18] sm:$0xff] %v1050_v13 }

</bundles_post_ra>
